<compile_context>
chip_gen: v6e
topology: v6e:2x2x1
jax: 0.10.0
libtpu: 0.0.40
codegen_flags: <defaults>
</compile_context>

<pallas_src>
import functools

import jax
import jax.numpy as jnp
from jax import lax
from jax.experimental import pallas as pl
from jax.experimental.pallas import tpu as pltpu

EPS = 1e-5          # module epsilon (debias clip)
_VAR_FLOOR = 1e-12  # numeric guard for f32 (v - m^2) cancellation


def _popart_kernel(ab_ref, x_ref, o_ref, *, unnorm: bool):
    """normalize: o = (x - a) * b   with a = mean, b = rsqrt(var)
       unnorm:    o = a + b * x     with a = mean, b = sqrt(var)

    ab_ref is the fused (2, tile_dim) statistics tile (row 0 = a, row 1 = b),
    precomputed in the wrapper, so the body is a single broadcasted mul-add.
    """
    x = x_ref[...].astype(jnp.float32)   # (tile_rows, tile_dim); no-op for f32
    ab = ab_ref[...]                     # (2, tile_dim)
    a = ab[0:1, :]
    b = ab[1:2, :]
    if unnorm:
        out = a + b * x
    else:
        out = (x - a) * b
    o_ref[...] = out.astype(o_ref.dtype)


def _tpu_generation():
    """Best-effort TPU generation detection (5 / 6 / 7 or None)."""
    try:
        kind = jax.devices()[0].device_kind.lower()
    except Exception:
        return None
    for g in (7, 6, 5):
        if f"v{g}" in kind:
            return g
    return None


def _gen_params(gen):
    """(target tile bytes, vmem_limit_bytes, min row-blocks for megacore)."""
    if gen == 7:
        # 3.2 TB/s HBM: bigger tiles to amortize the ~0.35us grid-step cost;
        # 4 x 8 MiB double-buffered footprint = 32 MiB < 48 MiB < 64 MiB phys.
        return 8 * 1024 * 1024, 48 * 1024 * 1024, 2
    if gen == 6:
        return 4 * 1024 * 1024, 64 * 1024 * 1024, 1
    if gen == 5:
        return 2 * 1024 * 1024, 32 * 1024 * 1024, 1
    # Unknown generation: conservative settings safe everywhere.
    return 2 * 1024 * 1024, 32 * 1024 * 1024, 1


def _choose_tiles(n_rows, dim, itemsize, target_bytes, min_steps):
    """Pick (tile_rows, tile_dim) so each x block is ~target_bytes.

    tile_rows is a multiple of the dtype's sublane packing (or the full row
    count when smaller); tile_dim tiles very wide feature dims in multiples of
    128 so a single block never balloons past the scoped-VMEM limit.
    min_steps keeps >= that many row blocks so a v7x megacore has parallel
    work (1 on single-TC chips -> no artificial tile shrinkage).
    """
    sub = max(8, 32 // max(1, itemsize))        # 8 f32, 16 bf16, 32 int8

    # Tile dim only when even an 8-row full-dim block would blow the budget.
    if dim % 128 == 0 and dim * itemsize * sub > target_bytes:
        tile_dim = min(dim, max(128, (target_bytes // (sub * itemsize)) // 128 * 128))
    else:
        tile_dim = dim

    row_bytes = max(1, tile_dim * itemsize)
    rows = max(sub, (target_bytes // row_bytes) // sub * sub)

    # Keep >= min_steps row blocks (megacore), but never force tiny tiles.
    cap = -(-n_rows // min_steps)               # cdiv
    cap = max(sub, -(-cap // sub) * sub)        # round up to sublane multiple
    rows = min(rows, cap)

    # Don't exceed the (rounded-up) row count; ragged last block is handled.
    rows = min(rows, max(sub, -(-n_rows // sub) * sub))
    if n_rows < sub:
        rows = n_rows                           # block dim == full array dim
    return int(rows), int(tile_dim)


def diagonal_popart_forward(x, m, v, debias, *, unnorm=False, tile_rows=None):
    """x: (..., dim); m, v: (dim,); debias: scalar/(1,).  Same shape/dtype out."""
    orig_shape = x.shape
    dim = orig_shape[-1]
    x2 = x.reshape(-1, dim)
    n = x2.shape[0]

    # --- Hoisted per-dim statistics (computed once, not per grid step) ------
    deb = jnp.maximum(jnp.asarray(debias, jnp.float32).reshape(-1)[0], EPS)
    m32 = m.astype(jnp.float32)
    v32 = v.astype(jnp.float32)
    mean = m32 / deb
    # Matches PyTorch (v - m^2) / debias; floor guards f32 cancellation NaNs.
    var = jnp.maximum((v32 - m32 * m32) / deb, _VAR_FLOOR)
    a = mean
    b = jnp.sqrt(var) if unnorm else lax.rsqrt(var)

    # --- Lane-dense packing for narrow dims (dim < 128, divides 128) --------
    pack = 1
    if dim < 128 and (128 % dim == 0):
        p = 128 // dim
        if n % p == 0:
            pack = p
    if pack > 1:
        x2 = x2.reshape(n // pack, dim * pack)   # metadata reshape, no HBM copy
        a = jnp.tile(a, pack)                    # dim-sized, free
        b = jnp.tile(b, pack)
    n_rows, n_dim = x2.shape
    ab = jnp.stack([a, b], axis=0)               # fused (2, n_dim) stats operand

    # --- Generation-aware tiling --------------------------------------------
    target_bytes, vmem_limit, min_steps = _gen_params(_tpu_generation())
    itemsize = jnp.dtype(x.dtype).itemsize
    rows, tile_dim = _choose_tiles(n_rows, n_dim, itemsize, target_bytes, min_steps)
    if tile_rows is not None:
        rows = int(tile_rows)

    # Non-divisible grid: ragged last blocks are padded on read, OOB writes
    # dropped (safe: kernel is purely elementwise).  No host-side padding.
    grid = (pl.cdiv(n_rows, rows), pl.cdiv(n_dim, tile_dim))
    kernel = functools.partial(_popart_kernel, unnorm=unnorm)

    out = pl.pallas_call(
        kernel,
        out_shape=jax.ShapeDtypeStruct((n_rows, n_dim), x.dtype),
        grid_spec=pltpu.PrefetchScalarGridSpec(
            num_scalar_prefetch=0,
            grid=grid,
            in_specs=[
                pl.BlockSpec((2, tile_dim), lambda i, j: (0, j)),        # a/b stats
                pl.BlockSpec((rows, tile_dim), lambda i, j: (i, j)),     # x
            ],
            out_specs=pl.BlockSpec((rows, tile_dim), lambda i, j: (i, j)),
        ),
        compiler_params=pltpu.CompilerParams(
            dimension_semantics=("parallel", "parallel"),
            vmem_limit_bytes=vmem_limit,
        ),
    )(ab, x2)

    if pack > 1:
        out = out.reshape(n, dim)
    return out.reshape(orig_shape)


def reference_forward(x, m, v, debias, unnorm=False):
    """Pure-JAX (float32) reference matching the PyTorch forward semantics."""
    deb = jnp.maximum(jnp.asarray(debias, jnp.float32), EPS)
    mean = m.astype(jnp.float32) / deb
    var = (v.astype(jnp.float32) - m.astype(jnp.float32) ** 2) / deb
    if unnorm:
        return (mean + jnp.sqrt(var) * x.astype(jnp.float32)).astype(x.dtype)
    return ((x.astype(jnp.float32) - mean) * lax.rsqrt(var)).astype(x.dtype)


if __name__ == "__main__":
    DIM = 128
    key = jax.random.PRNGKey(0)
    kx, km, kv, kx2, kx3 = jax.random.split(key, 5)

    # Synthetic, deterministic buffer init (mirrors __init__ shapes):
    #   m: (dim,), v: (dim,), debias: (1,); weight/bias are unused in forward.
    m = jax.random.normal(km, (DIM,), jnp.float32) * 0.3
    v = m * m + jax.random.uniform(kv, (DIM,), jnp.float32, 0.5, 2.0) + EPS
    debias = jnp.array([0.7], jnp.float32)

    # Main case: x is (..., dim).
    x = jax.random.normal(kx, (2, 8, DIM), jnp.float32)

    out = jax.block_until_ready(diagonal_popart_forward(x, m, v, debias, unnorm=False))
    ref = reference_forward(x, m, v, debias, unnorm=False)
    assert out.shape == x.shape and out.dtype == x.dtype
    assert jnp.allclose(out, ref, atol=1e-5, rtol=1e-5)

    out_u = jax.block_until_ready(diagonal_popart_forward(x, m, v, debias, unnorm=True))
    ref_u = reference_forward(x, m, v, debias, unnorm=True)
    assert jnp.allclose(out_u, ref_u, atol=1e-5, rtol=1e-5)

    # Ragged (non-divisible) grid path: N % tile_rows != 0, no host-side padding.
    x_rag = jax.random.normal(kx2, (20, DIM), jnp.float32)
    out_rag = jax.block_until_ready(
        diagonal_popart_forward(x_rag, m, v, debias, tile_rows=8))
    ref_rag = reference_forward(x_rag, m, v, debias)
    assert jnp.allclose(out_rag, ref_rag, atol=1e-5, rtol=1e-5)

    # Lane-packing path: dim < 128 -> rows packed into a 128-lane-dense layout.
    DIM_S = 64
    m_s, v_s = m[:DIM_S], v[:DIM_S]
    x_s = jax.random.normal(kx3, (16, DIM_S), jnp.float32)
    out_s = jax.block_until_ready(diagonal_popart_forward(x_s, m_s, v_s, debias))
    ref_s = reference_forward(x_s, m_s, v_s, debias)
    assert out_s.shape == x_s.shape
    assert jnp.allclose(out_s, ref_s, atol=1e-5, rtol=1e-5)

    print("KERNEL_OK")
</pallas_src>

<mosaic_0001>
module attributes {stable_mosaic.version = 11 : i64} {
  func.func @_popart_kernel(%arg0: i32, %arg1: i32, %arg2: memref<2x128xf32, #tpu.memory_space<vmem>>, %arg3: memref<16x128xf32, #tpu.memory_space<vmem>>, %arg4: memref<16x128xf32, #tpu.memory_space<vmem>>) attributes {dimension_semantics = [#tpu.dimension_semantics<parallel>, #tpu.dimension_semantics<parallel>], iteration_bounds = array<i64: 1, 1>, scalar_prefetch = 0 : i64, scratch_operands = 0 : i64, tpu.core_type = #tpu.core_type<tc>, window_params = [{transform_indices = @transform_0, window_bounds = array<i64: 2, 128>}, {transform_indices = @transform_1, window_bounds = array<i64: 16, 128>}, {transform_indices = @transform_2, window_bounds = array<i64: 16, 128>}]} {
    %c0 = arith.constant 0 : index
    %c0_0 = arith.constant 0 : index
    %0 = vector.load %arg3[%c0, %c0_0] : memref<16x128xf32, #tpu.memory_space<vmem>>, vector<16x128xf32>
    %c0_1 = arith.constant 0 : index
    %c0_2 = arith.constant 0 : index
    %1 = vector.load %arg2[%c0_1, %c0_2] : memref<2x128xf32, #tpu.memory_space<vmem>>, vector<2x128xf32>
    %2 = vector.extract_strided_slice %1 {offsets = [0, 0], sizes = [1, 128], strides = [1, 1]} : vector<2x128xf32> to vector<1x128xf32>
    %3 = vector.extract_strided_slice %1 {offsets = [1, 0], sizes = [1, 128], strides = [1, 1]} : vector<2x128xf32> to vector<1x128xf32>
    %4 = vector.broadcast %2 : vector<1x128xf32> to vector<16x128xf32>
    %5 = arith.subf %0, %4 : vector<16x128xf32>
    %6 = vector.broadcast %3 : vector<1x128xf32> to vector<16x128xf32>
    %7 = arith.mulf %5, %6 : vector<16x128xf32>
    %c0_3 = arith.constant 0 : index
    %c0_4 = arith.constant 0 : index
    %8 = vector.load %arg4[%c0_3, %c0_4] : memref<16x128xf32, #tpu.memory_space<vmem>>, vector<16x128xf32>
    tpu.vector_store %arg4[%c0_3, %c0_4], %7 {strides = array<i32>} : memref<16x128xf32, #tpu.memory_space<vmem>>, vector<16x128xf32>,
    return
  }
  func.func @transform_0(%arg0: i32, %arg1: i32) -> (i32, i32) {
    %c0_i32 = arith.constant 0 : i32
    %c0_i32_0 = arith.constant 0 : i32
    return %c0_i32, %arg1 : i32, i32
  }
  func.func @transform_1(%arg0: i32, %arg1: i32) -> (i32, i32) {
    %c0_i32 = arith.constant 0 : i32
    return %arg0, %arg1 : i32, i32
  }
  func.func @transform_2(%arg0: i32, %arg1: i32) -> (i32, i32) {
    %c0_i32 = arith.constant 0 : i32
    return %arg0, %arg1 : i32, i32
  }
}

</mosaic_0001>

<bundles_post_ra>
// kernel: tpu_custom_call.1
= control target key start
LH: loop header
LB: loop body
LE: loop exit
PB: predicated region body
PF: predicated region fallthrough
CT: control target
= control target key end

     0   :  { %7 = vsyncpa [#allocation3], 0  ;;  %s179_s0 = inlined_call_operand.hbm [shape: f32[2,128], index: 0, kind: input, shape index: {}]   ;;  %s180_s1 = inlined_call_operand.hbm [shape: f32[16,128], index: 1, kind: input, shape index: {}]   ;;  %s181_s2 = inlined_call_operand.hbm [shape: f32[16,128], index: 2, kind: output, shape index: {}]  }
   0x1   :  { %8 = vsyncpa [#allocation6], 0 }
   0x2   :  { %9 = vsyncpa [#allocation4], 0  ;;  %s144_s9 = smov [#allocation2]   ;;  %s145_s11 = smov [#allocation5]  }
   0x3   :  { %s16_s10 = sshll.u32 %s144_s9, 4  ;;  %s25_s12 = sshll.u32 %s145_s11, 4  ;;  %s17_s10 = int_to_ptr.vmem [resolvable:$true] %s16_s10  ;;  %s26_s12 = int_to_ptr.vmem [resolvable:$true] %s25_s12 }
   0x4   :  { %s86_s13 = scalar_lea.vmem %s17_s10, 32  ;;  %p91_p1 = scmp.lt.s32.totalorder %s17_s10, %s17_s10 }
   0x5   :  { %p87_p0 = scmp.ne.s32.totalorder %s17_s10, %s86_s13  ;;  %p92_p2 = scmp.lt.s32.totalorder %s86_s13, %s86_s13 }
   0x7   :  { %p93_p3 = por %p92_p2, %p91_p1 }
   0x9   :  { %p94_p4 = pnand %p93_p3, %p87_p0 }
   0xb   :  { %97 = shalt.err (!%p94_p4)
}
   0xc   :  { %19 = dma.hbm_to_vmem [thread:$0]  %s179_s0, 32, %s17_s10, [#allocation3]  }
   0xd   :  { %s106_s16 = scalar_lea.vmem %s26_s12, 256  ;;  %p111_p6 = scmp.lt.s32.totalorder %s26_s12, %s26_s12 }
   0xe   :  { %p107_p5 = scmp.ne.s32.totalorder %s26_s12, %s106_s16  ;;  %p112_p7 = scmp.lt.s32.totalorder %s106_s16, %s106_s16 }
  0x10   :  { %p113_p8 = por %p112_p7, %p111_p6 }
  0x12   :  { %p114_p9 = pnand %p113_p8, %p107_p5 }
  0x14   :  { %117 = shalt.err (!%p114_p9)
}
  0x15   :  { %s146_s17 = smov 128   ;;  %s147_s18 = smov 8  }
  0x16   :  { %31 = dma.hbm_to_vmem [thread:$0]  %s180_s1, 256, %s26_s12, [#allocation6], %s146_s17, %s146_s17, %s147_s18  }
  0x17   :  { %138 = dma.done.wait [#allocation3], 32  }
  0x18   :  { %139 = vsyncadd [#allocation3], 4294967264 }
  0x19   :  { %140 = dma.done.wait [#allocation6], 256  }
  0x1a   :  { %141 = vsyncadd [#allocation6], 4294967040  ;;  %v41_v0 = vlaneseq  ;;  %v38_v4 = vld [vmem:[#allocation5] sm:$0xff]  ;;  %v40_v5 = vld [vmem:[#allocation2] sm:$0x3]  ;;  %s148_s0 = smov [#allocation7]  }
  0x1b   :  { %v39_v6 = vld [vmem:[#allocation5 + $0x8] sm:$0xff]  ;;  %s60_s21 = sshll.u32 %s148_s0, 4  ;;  %s61_s21 = int_to_ptr.vmem [resolvable:$true] %s60_s21 }
  0x1c   :  { %v42_v1 = vshrl.u32 %v41_v0, 7  ;;  %s118_s1 = scalar_lea.vmem %s61_s21, 256  ;;  %p123_p11 = scmp.lt.s32.totalorder %s61_s21, %s61_s21 }
  0x1d   :  { %p119_p10 = scmp.ne.s32.totalorder %s61_s21, %s118_s1  ;;  %p124_p12 = scmp.lt.s32.totalorder %s118_s1, %s118_s1 }
  0x1e   :  { %v43_v2 = vsub.s32 0, %v42_v1  ;;  %v49_v3 = vsub.s32 1, %v42_v1 }
  0x1f   :  { %p125_p13 = por %p124_p12, %p123_p11 }
  0x20   :  { %v44_v7 = vrot.slane %v40_v5, %v43_v2  ;;  %v50_v8 = vrot.slane %v40_v5, %v49_v3 }
  0x21   :  { %p126_p0 = pnand %p125_p13, %p119_p10 }
  0x22   :  { %v45_v9 = vsub.f32 %v38_v4, %v44_v7  ;;  %v46_v10 = vsub.f32 %v39_v6, %v44_v7 }
  0x24   :  { %v51_v11 = vmul.f32 %v50_v8, %v45_v9  ;;  %v52_v12 = vmul.f32 %v50_v8, %v46_v10 }
  0x26   :  { %53 = vst [vmem:[#allocation7] sm:$0xff] %v51_v11  ;;  %54 = vst [vmem:[#allocation7 + $0x8] sm:$0xff] %v52_v12 }
  0x27   :  { %129 = shalt.err (!%p126_p0)
}
  0x28   :  { %66 = dma.vmem_to_hbm [thread:$0]  %s61_s21, 256, %s181_s2, [#allocation4], %s146_s17, %s146_s17, %s147_s18  }
  0x29   :  { %142 = dma.done.wait [#allocation4], 256  }
  0x2a   :  { %143 = vsyncadd [#allocation4], 4294967040 }
  0x2b   :  { %70 = vsyncpa [#allocation3], 1 }
  0x2c   :  { %71 = vsyncpa [#allocation6], 1 }
  0x2d   :  { %72 = vsyncpa [#allocation4], 1 }

</bundles_post_ra>
